<compile_context>
chip_gen: v7x
topology: tpu7x:2x2x1
jax: 0.10.0
libtpu: 0.0.40
codegen_flags: <defaults>
</compile_context>

<pallas_src>
import jax
import jax.numpy as jnp
from jax.experimental import pallas as pl
from jax.experimental.pallas import tpu as pltpu  # noqa: F401  (TPU backend)

# ----------------------------- configuration -------------------------------
RES      = (16, 16)   # (res[0]=W, res[1]=H)
SIDE_LEN = 16
TIME_LEN = 8

LT        = 8                 # time frequencies   -> mp_in  = 2*LT = 16
LC        = 8                 # coord frequencies  -> mp_out = 4*LC = 32
MP_IN     = 2 * LT            # 16
MP_HIDDEN = 32
MP_OUT    = 4 * LC            # 32
MF_IN     = MP_OUT            # 32  (c_tensor feature dim)
MF_HIDDEN = 64
MF_OUT    = 3                 # RGB
OUT_PAD   = 128               # lane-dense padded output width


# ------------------------------ Pallas kernel ------------------------------
def nivr_kernel(r_ref, enc_ref,
                mpw1_ref, mpb1_ref, mpw2t_ref, mpb2c_ref,
                mfw1_ref, mfb1_ref, mfw2p_ref, mfb2p_ref,
                o_ref):
    """Fused NIVR forward: time MLP + phi fold into W1 + per-pixel MLP.

    Shapes (all full-array VMEM blocks, no grid):
      r      (1, MP_IN)          enc    (N, MF_IN)
      mp_w1  (MP_IN, MP_HIDDEN)  mp_b1  (1, MP_HIDDEN)
      mp_w2T (MP_OUT, MP_HIDDEN) mp_b2c (MP_OUT, 1)
      mf_w1  (MF_IN, MF_HIDDEN)  mf_b1  (1, MF_HIDDEN)
      mf_w2p (MF_HIDDEN, 128)    mf_b2p (1, 128)
      out    (N, 128)            (lane-dense; wrapper slices [:, :3])
    """
    # ---- mp (time) MLP, layer 1 in row form: (1,16)@(16,32) ----
    h = jnp.dot(r_ref[...], mpw1_ref[...], preferred_element_type=jnp.float32)
    h = jnp.maximum(h + mpb1_ref[...], 0.0)                         # (1, MP_HIDDEN)

    # ---- mp layer 2 directly in COLUMN form via a lane (XLU) reduction ----
    # phi_col[i] = sum_j W2[j, i] * h[j] + b2[i]  ==  (h @ W2 + b2)^T
    phi_col = (jnp.sum(mpw2t_ref[...] * h, axis=1, keepdims=True)
               + mpb2c_ref[...])                                    # (MF_IN, 1)

    # ---- fold modulation into W1:  (enc * phi_row) @ W1 == enc @ (phi_col*W1) ----
    w1_mod = mfw1_ref[...] * phi_col                                # (MF_IN, MF_HIDDEN)

    # ---- mf (pixel) MLP over the whole flattened pixel slab ----
    a = jnp.dot(enc_ref[...], w1_mod, preferred_element_type=jnp.float32)
    a = jnp.maximum(a + mfb1_ref[...], 0.0)                         # (N, MF_HIDDEN)
    o_ref[...] = (jnp.dot(a, mfw2p_ref[...], preferred_element_type=jnp.float32)
                  + mfb2p_ref[...])                                 # (N, 128)


def nivr_pallas(r_tensor, enc_flat, params):
    """Single fused pallas_call. Full-array blocks (grid-less), VMEM resident."""
    n = enc_flat.shape[0]
    # Tiny param reshapes/pads (constant-sized; fused/folded by XLA).
    mp_w2_t = params["mp_w2"].T                                     # (MP_OUT, MP_HIDDEN)
    mp_b2_c = params["mp_b2"].reshape(MP_OUT, 1)                    # (MP_OUT, 1)
    mf_w2_p = jnp.pad(params["mf_w2"], ((0, 0), (0, OUT_PAD - MF_OUT)))
    mf_b2_p = jnp.pad(params["mf_b2"], ((0, 0), (0, OUT_PAD - MF_OUT)))

    out_pad = pl.pallas_call(
        nivr_kernel,
        out_shape=jax.ShapeDtypeStruct((n, OUT_PAD), jnp.float32),
    )(r_tensor, enc_flat,
      params["mp_w1"], params["mp_b1"], mp_w2_t, mp_b2_c,
      params["mf_w1"], params["mf_b1"], mf_w2_p, mf_b2_p)

    return out_pad[:, :MF_OUT]


# --------------------------- JAX glue (encoders) ----------------------------
def get_t(time_len, frame_idx):
    return jnp.float32(frame_idx) / jnp.float32(time_len)


def position_encoder_t(t, time_len):
    # Fourier features of the scalar time -> (1, MP_IN)
    freqs = (2.0 ** jnp.arange(LT, dtype=jnp.float32)) * jnp.pi
    feats = jnp.concatenate([jnp.sin(freqs * t), jnp.cos(freqs * t)])
    return feats.reshape(1, MP_IN).astype(jnp.float32)


def position_encoder_c_features(coords):
    # coords: (H, W, 2) in [-1, 1].
    # Per-frequency features stacked as (LC, H, W, 4) then permute(1,2,0,3)
    # .view(H, W, LC*4), exactly like the reference's layout.
    # TODO(synk): at video resolutions, generate these Fourier features inside
    # the kernel from the 2-channel coords to cut kernel input HBM traffic ~16x.
    H, W, _ = coords.shape
    levels = []
    for k in range(LC):
        f = (2.0 ** k) * jnp.pi
        levels.append(jnp.concatenate(
            [jnp.sin(f * coords), jnp.cos(f * coords)], axis=-1))   # (H, W, 4)
    stacked = jnp.stack(levels, axis=0)                             # (LC, H, W, 4)
    return jnp.transpose(stacked, (1, 2, 0, 3)).reshape(H, W, LC * 4)


def nivr_forward(params, coords, frame_idx):
    """Equivalent of NIVR.forward(x, idx) with x['coords'] == coords (squeezed)."""
    H, W = RES[1], RES[0]
    t = get_t(TIME_LEN, frame_idx)
    r_tensor = position_encoder_t(t, TIME_LEN)                      # (1, MP_IN)
    c_feats = position_encoder_c_features(coords)                   # (H, W, MF_IN)
    enc_flat = c_feats.reshape(H * W, MF_IN)
    out_flat = nivr_pallas(r_tensor, enc_flat, params)              # (H*W, MF_OUT)
    return out_flat.reshape(H, W, MF_OUT)                           # (res[1], res[0], mf_out)


def nivr_reference(params, coords, frame_idx):
    """Pure-jnp reference of the same math (for correctness checking)."""
    t = get_t(TIME_LEN, frame_idx)
    r = position_encoder_t(t, TIME_LEN)
    h = jnp.maximum(r @ params["mp_w1"] + params["mp_b1"], 0.0)
    phi = h @ params["mp_w2"] + params["mp_b2"]                     # (1, MF_IN)
    enc = position_encoder_c_features(coords).reshape(-1, MF_IN) * phi
    a = jnp.maximum(enc @ params["mf_w1"] + params["mf_b1"], 0.0)
    out = a @ params["mf_w2"] + params["mf_b2"]
    return out.reshape(RES[1], RES[0], MF_OUT)


# ------------------------------- parameters ---------------------------------
def init_params(key):
    ks = jax.random.split(key, 4)

    def linear(k, fan_in, fan_out):
        lim = 1.0 / jnp.sqrt(jnp.float32(fan_in))
        return jax.random.uniform(k, (fan_in, fan_out), jnp.float32, -lim, lim)

    return {
        "mp_w1": linear(ks[0], MP_IN, MP_HIDDEN),
        "mp_b1": jnp.zeros((1, MP_HIDDEN), jnp.float32),
        "mp_w2": linear(ks[1], MP_HIDDEN, MP_OUT),
        "mp_b2": jnp.zeros((1, MP_OUT), jnp.float32),
        "mf_w1": linear(ks[2], MF_IN, MF_HIDDEN),
        "mf_b1": jnp.zeros((1, MF_HIDDEN), jnp.float32),
        "mf_w2": linear(ks[3], MF_HIDDEN, MF_OUT),
        "mf_b2": jnp.zeros((1, MF_OUT), jnp.float32),
    }


# ---------------------------------- main -------------------------------------
if __name__ == "__main__":
    key = jax.random.PRNGKey(0)
    params = init_params(key)

    # x['coords']: normalized pixel grid in [-1, 1], (1,H,W,2) -> squeeze -> (H,W,2)
    H, W = RES[1], RES[0]
    ys = jnp.linspace(-1.0, 1.0, H, dtype=jnp.float32)
    xs = jnp.linspace(-1.0, 1.0, W, dtype=jnp.float32)
    gy, gx = jnp.meshgrid(ys, xs, indexing="ij")
    coords = jnp.stack([gy, gx], axis=-1)          # (16, 16, 2)

    frame_idx = 3                                   # idx argument

    # TODO(synk): mp/mf module definitions and the position_encoder_* helpers are
    # not present in the provided snippet; reconstructed with standard NIVR
    # Fourier-feature + 2-layer-MLP semantics.
    out = jax.jit(nivr_forward, static_argnums=(2,))(params, coords, frame_idx)
    out = jax.block_until_ready(out)

    ref = jax.jit(nivr_reference, static_argnums=(2,))(params, coords, frame_idx)
    ref = jax.block_until_ready(ref)

    assert out.shape == (RES[1], RES[0], MF_OUT), out.shape
    assert jnp.all(jnp.isfinite(out))
    assert jnp.allclose(out, ref, rtol=1e-3, atol=1e-3), float(jnp.max(jnp.abs(out - ref)))
    print("KERNEL_OK")
</pallas_src>

<mosaic_0001>
module attributes {stable_mosaic.version = 11 : i64} {
  func.func @nivr_kernel(%arg0: memref<1x16xf32, #tpu.memory_space<vmem>>, %arg1: memref<256x32xf32, #tpu.memory_space<vmem>>, %arg2: memref<16x32xf32, #tpu.memory_space<vmem>>, %arg3: memref<1x32xf32, #tpu.memory_space<vmem>>, %arg4: memref<32x32xf32, #tpu.memory_space<vmem>>, %arg5: memref<32x1xf32, #tpu.memory_space<vmem>>, %arg6: memref<32x64xf32, #tpu.memory_space<vmem>>, %arg7: memref<1x64xf32, #tpu.memory_space<vmem>>, %arg8: memref<64x128xf32, #tpu.memory_space<vmem>>, %arg9: memref<1x128xf32, #tpu.memory_space<vmem>>, %arg10: memref<256x128xf32, #tpu.memory_space<vmem>>) attributes {dimension_semantics = [], scalar_prefetch = 0 : i64, scratch_operands = 0 : i64, tpu.core_type = #tpu.core_type<tc>} {
    %c0 = arith.constant 0 : index
    %c0_0 = arith.constant 0 : index
    %0 = vector.load %arg0[%c0, %c0_0] : memref<1x16xf32, #tpu.memory_space<vmem>>, vector<1x16xf32>
    %c0_1 = arith.constant 0 : index
    %c0_2 = arith.constant 0 : index
    %1 = vector.load %arg2[%c0_1, %c0_2] : memref<16x32xf32, #tpu.memory_space<vmem>>, vector<16x32xf32>
    %cst = arith.constant dense<0.000000e+00> : vector<1x32xf32>
    %2 = tpu.matmul %0, %1, %cst {dimension_numbers = #tpu.dot_dimension_numbers<[1], [0], [0], [1], [0, 0, 1, 1], [], []>} : vector<1x16xf32>, vector<16x32xf32>, vector<1x32xf32> -> vector<1x32xf32>
    %c0_3 = arith.constant 0 : index
    %c0_4 = arith.constant 0 : index
    %3 = vector.load %arg3[%c0_3, %c0_4] : memref<1x32xf32, #tpu.memory_space<vmem>>, vector<1x32xf32>
    %4 = arith.addf %2, %3 : vector<1x32xf32>
    %cst_5 = arith.constant 0.000000e+00 : f32
    %5 = vector.broadcast %cst_5 : f32 to vector<1x32xf32>
    %6 = arith.maximumf %4, %5 : vector<1x32xf32>
    %c0_6 = arith.constant 0 : index
    %c0_7 = arith.constant 0 : index
    %7 = vector.load %arg4[%c0_6, %c0_7] : memref<32x32xf32, #tpu.memory_space<vmem>>, vector<32x32xf32>
    %8 = vector.broadcast %6 : vector<1x32xf32> to vector<32x32xf32>
    %9 = arith.mulf %7, %8 : vector<32x32xf32>
    %cst_8 = arith.constant dense<0.000000e+00> : vector<32xf32>
    %10 = vector.multi_reduction <add>, %9, %cst_8 [1] : vector<32x32xf32> to vector<32xf32>
    %11 = vector.shape_cast %10 : vector<32xf32> to vector<32x1xf32>
    %c0_9 = arith.constant 0 : index
    %c0_10 = arith.constant 0 : index
    %12 = vector.load %arg5[%c0_9, %c0_10] : memref<32x1xf32, #tpu.memory_space<vmem>>, vector<32x1xf32>
    %13 = arith.addf %11, %12 : vector<32x1xf32>
    %c0_11 = arith.constant 0 : index
    %c0_12 = arith.constant 0 : index
    %14 = vector.load %arg6[%c0_11, %c0_12] : memref<32x64xf32, #tpu.memory_space<vmem>>, vector<32x64xf32>
    %15 = vector.broadcast %13 : vector<32x1xf32> to vector<32x64xf32>
    %16 = arith.mulf %14, %15 : vector<32x64xf32>
    %c0_13 = arith.constant 0 : index
    %c0_14 = arith.constant 0 : index
    %17 = vector.load %arg1[%c0_13, %c0_14] : memref<256x32xf32, #tpu.memory_space<vmem>>, vector<256x32xf32>
    %cst_15 = arith.constant dense<0.000000e+00> : vector<256x64xf32>
    %18 = tpu.matmul %17, %16, %cst_15 {dimension_numbers = #tpu.dot_dimension_numbers<[1], [0], [0], [1], [0, 0, 1, 1], [], []>} : vector<256x32xf32>, vector<32x64xf32>, vector<256x64xf32> -> vector<256x64xf32>
    %c0_16 = arith.constant 0 : index
    %c0_17 = arith.constant 0 : index
    %19 = vector.load %arg7[%c0_16, %c0_17] : memref<1x64xf32, #tpu.memory_space<vmem>>, vector<1x64xf32>
    %20 = vector.broadcast %19 : vector<1x64xf32> to vector<256x64xf32>
    %21 = arith.addf %18, %20 : vector<256x64xf32>
    %cst_18 = arith.constant 0.000000e+00 : f32
    %22 = vector.broadcast %cst_18 : f32 to vector<256x64xf32>
    %23 = arith.maximumf %21, %22 : vector<256x64xf32>
    %c0_19 = arith.constant 0 : index
    %c0_20 = arith.constant 0 : index
    %24 = vector.load %arg8[%c0_19, %c0_20] : memref<64x128xf32, #tpu.memory_space<vmem>>, vector<64x128xf32>
    %cst_21 = arith.constant dense<0.000000e+00> : vector<256x128xf32>
    %25 = tpu.matmul %23, %24, %cst_21 {dimension_numbers = #tpu.dot_dimension_numbers<[1], [0], [0], [1], [0, 0, 1, 1], [], []>} : vector<256x64xf32>, vector<64x128xf32>, vector<256x128xf32> -> vector<256x128xf32>
    %c0_22 = arith.constant 0 : index
    %c0_23 = arith.constant 0 : index
    %26 = vector.load %arg9[%c0_22, %c0_23] : memref<1x128xf32, #tpu.memory_space<vmem>>, vector<1x128xf32>
    %27 = vector.broadcast %26 : vector<1x128xf32> to vector<256x128xf32>
    %28 = arith.addf %25, %27 : vector<256x128xf32>
    %c0_24 = arith.constant 0 : index
    %c0_25 = arith.constant 0 : index
    %29 = vector.load %arg10[%c0_24, %c0_25] : memref<256x128xf32, #tpu.memory_space<vmem>>, vector<256x128xf32>
    tpu.vector_store %arg10[%c0_24, %c0_25], %28 {strides = array<i32>} : memref<256x128xf32, #tpu.memory_space<vmem>>, vector<256x128xf32>,
    return
  }
}

</mosaic_0001>

<bundles_post_ra>
// kernel: nivr_forward.1
= control target key start
LH: loop header
LB: loop body
LE: loop exit
PB: predicated region body
PF: predicated region fallthrough
CT: control target
= control target key end

     0   :  { %v1246_v0 = vmov 0.0|0.0   ;;  %vm1247_vm0 = vmmov 0   ;;  %v1248_v3 = vmov 0.0   ;;  %vm39_vm1 = vcmask 130048   ;;  %s1711_s2 = inlined_call_operand.vmem [shape: f32[16,32], index: 2, kind: input, shape index: {}]   ;;  %s1712_s0 = inlined_call_operand.vmem [shape: f32[1,16], index: 0, kind: input, shape index: {}]   ;;  %s1713_s3 = inlined_call_operand.vmem [shape: f32[1,32], index: 3, kind: input, shape index: {}]   ;;  %s1714_s4 = inlined_call_operand.vmem [shape: f32[32,32], index: 4, kind: input, shape index: {}]   ;;  %s1715_s5 = inlined_call_operand.vmem [shape: f32[32,1], index: 5, kind: input, shape index: {}]   ;;  %s1716_s1 = inlined_call_operand.vmem [shape: f32[256,32], index: 1, kind: input, shape index: {}]   ;;  %s1717_s8 = inlined_call_operand.vmem [shape: f32[64,128], index: 8, kind: input, shape index: {}]   ;;  %s1718_s6 = inlined_call_operand.vmem [shape: f32[32,64], index: 6, kind: input, shape index: {}]   ;;  %s1719_s7 = inlined_call_operand.vmem [shape: f32[1,64], index: 7, kind: input, shape index: {}]   ;;  %s1720_s9 = inlined_call_operand.vmem [shape: f32[1,128], index: 9, kind: input, shape index: {}]   ;;  %s1721_s10 = inlined_call_operand.vmem [shape: f32[256,128], index: 10, kind: output, shape index: {}]  }
   0x1   :  { %1213 = vmatprep.subr.bf16.mxu1 %v1246_v0  ;;  %v36_v1 = vld [vmem:[%s1711_s2] sm:$0xff]  ;;  %v37_v2 = vld [vmem:[%s1711_s2 + $0x8] sm:$0xff]  ;;  %1090 = vmatprep.mubr.msk.f32.mxu1 %vm1247_vm0, %v1248_v3  ;;  %v118_v6 = vlaneseq  ;;  %v116_v14 = vld [vmem:[%s1714_s4 + $0x10] sm:$0xff]  ;;  %vm126_vm2 = vcmask 261120   ;;  %v1249_v27 = vmov 0   ;;  %vm582_vm3 = vcmask 523264  }
   0x2   :  { %v1214_v4 = vpack.c.bf16 %v37_v2, %v36_v1  ;;  %v35_v5 = vld [vmem:[%s1712_s0] sm:$0x1]  ;;  %v117_v17 = vld [vmem:[%s1714_s4 + $0x18] sm:$0xff]  ;;  %v115_v18 = vld [vmem:[%s1714_s4 + $0x8] sm:$0xff]  ;;  %1244 = vset.pattern.permute.xlu0 %v1249_v27  ;;  %1245 = vset.pattern.permute.xlu1 %v1249_v27 }
   0x3   :  { %v119_v7 = vshrl.u32 %v118_v6, 7  ;;  %v38_v8 = vld [vmem:[%s1713_s3] sm:$0x1]  ;;  %v140_v31 = vld [vmem:[%s1715_s5 + $0x8] sm:$0xff]  ;;  %v141_v35 = vld [vmem:[%s1715_s5 + $0x10] sm:$0xff] }
   0x4   :  { %1215 = vmatpush3.bf16.msra.mxu1 %v1214_v4  ;;  %v114_v15 = vld [vmem:[%s1714_s4] sm:$0xff]  ;;  %v142_v37 = vld [vmem:[%s1715_s5 + $0x18] sm:$0xff]  ;;  %v568_v42 = vld [vmem:[%s1717_s8 + $0x8] sm:$0xff] }
   0x5   :  { %v120_v11 = vsub.s32 0, %v119_v7  ;;  %v139_v28 = vld [vmem:[%s1715_s5] sm:$0xff]  ;;  %v569_v43 = vld [vmem:[%s1717_s8 + $0x10] sm:$0xff]  ;;  %v570_v45 = vld [vmem:[%s1717_s8 + $0x18] sm:$0xff] }
   0x6   :  { %v175_v40 = vld [vmem:[%s1716_s1] sm:$0xff]  ;;  %v1228_v46 = vpack.c.bf16 %v570_v45, %v569_v43  ;;  %v572_v48 = vld [vmem:[%s1717_s8 + $0x28] sm:$0xff]  ;;  %v149_v58 = vld [vmem:[%s1718_s6 + $0x10] sm:$0xff] }
   0x7   :  { %1091 = vmatmul.mubr.msk.f32.vlgmr.msra.gmra.mrb[0].mxu1 %vm39_vm1, %v35_v5  ;;  %v567_v41 = vld [vmem:[%s1717_s8] sm:$0xff]  ;;  %v148_v52 = vld [vmem:[%s1718_s6 + $0x8] sm:$0xff]  ;;  %v150_v59 = vld [vmem:[%s1718_s6 + $0x18] sm:$0xff] }
   0x8   :  { %1101 = vmatprep.mubr.msk.f32.mxu1 %vm126_vm2, %v175_v40  ;;  %v1224_v44 = vpack.c.bf16 %v568_v42, %v567_v41  ;;  %v571_v47 = vld [vmem:[%s1717_s8 + $0x20] sm:$0xff]  ;;  %v176_v0 = vld [vmem:[%s1716_s1 + $0x8] sm:$0xff]  ;;  %v177_v1 = vld [vmem:[%s1716_s1 + $0x10] sm:$0xff] }
   0x9   :  { %v1232_v49 = vpack.c.bf16 %v572_v48, %v571_v47  ;;  %v147_v50 = vld [vmem:[%s1718_s6] sm:$0xff]  ;;  %v178_v2 = vld [vmem:[%s1716_s1 + $0x18] sm:$0xff]  ;;  %v180_v4 = vld [vmem:[%s1716_s1 + $0x28] sm:$0xff] }
   0xa   :  { %1225 = vmatprep.subr.bf16.mxu0 %v1224_v44  ;;  %v179_v3 = vld [vmem:[%s1716_s1 + $0x20] sm:$0xff]  ;;  %v181_v5 = vld [vmem:[%s1716_s1 + $0x30] sm:$0xff]  ;;  %v182_v6 = vld [vmem:[%s1716_s1 + $0x38] sm:$0xff] }
   0xb   :  { %1227 = vmatpush3.bf16.msra.mxu0 %v1224_v44  ;;  %v183_v7 = vld [vmem:[%s1716_s1 + $0x40] sm:$0xff] }
   0xc   :  { %1229 = vmatprep.subr.bf16.mxu0 %v1228_v46  ;;  %v203_v27 = vld [vmem:[%s1716_s1 + $0xe0] sm:$0xff] }
   0xf   :  { %1231 = vmatpush3.bf16.msra.mxu0 %v1228_v46 }
  0x10   :  { %1233 = vmatprep.subr.bf16.mxu0 %v1232_v49 }
  0x13   :  { %1235 = vmatpush3.bf16.msra.mxu0 %v1232_v49 }
  0xda   :  { %v109_v9 = vpop.f32.mrb[0].mxu1 }
  0xdb   :  { %v110_v10 = vadd.f32 %v109_v9, %v38_v8  ;;  %v1092_v12 = vpop.f32.mrb[1].mxu1  ;;  %v184_v8 = vld [vmem:[%s1716_s1 + $0x48] sm:$0xff]  ;;  %v185_v9 = vld [vmem:[%s1716_s1 + $0x50] sm:$0xff] }
  0xdc   :  { %v188_v12 = vld [vmem:[%s1716_s1 + $0x68] sm:$0xff] }
  0xdd   :  { %v113_v13 = vmax.f32 %v110_v10, 0.0  ;;  %v186_v10 = vld [vmem:[%s1716_s1 + $0x58] sm:$0xff] }
  0xdf   :  { %v121_v16 = vrot.slane %v113_v13, %v120_v11  ;;  %v187_v11 = vld [vmem:[%s1716_s1 + $0x60] sm:$0xff]  ;;  %v189_v13 = vld [vmem:[%s1716_s1 + $0x70] sm:$0xff] }
  0xe1   :  { %v124_v19 = vmul.f32 %v121_v16, %v116_v14  ;;  %v122_v20 = vmul.f32 %v121_v16, %v114_v15  ;;  %v125_v23 = vmul.f32 %v121_v16, %v117_v17  ;;  %v123_v24 = vmul.f32 %v121_v16, %v115_v18  ;;  %v190_v14 = vld [vmem:[%s1716_s1 + $0x78] sm:$0xff]  ;;  %v191_v15 = vld [vmem:[%s1716_s1 + $0x80] sm:$0xff]  ;;  %v192_v16 = vld [vmem:[%s1716_s1 + $0x88] sm:$0xff] }
  0xe2   :  { %v193_v17 = vld [vmem:[%s1716_s1 + $0x90] sm:$0xff]  ;;  %v194_v18 = vld [vmem:[%s1716_s1 + $0x98] sm:$0xff] }
  0xe3   :  { %v133_v21 = vsel %vm126_vm2, %v124_v19, 0.0  ;;  %v127_v22 = vsel %vm126_vm2, %v122_v20, 0.0  ;;  %v136_v25 = vsel %vm126_vm2, %v125_v23, 0.0  ;;  %v130_v26 = vsel %vm126_vm2, %v123_v24, 0.0  ;;  %v195_v19 = vld [vmem:[%s1716_s1 + $0xa0] sm:$0xff]  ;;  %v196_v20 = vld [vmem:[%s1716_s1 + $0xa8] sm:$0xff] }
  0xe4   :  { %134 = vadd.xlane.f32.xlu1 %v133_v21  ;;  %128 = vadd.xlane.f32.xlu0 %v127_v22  ;;  %v197_v21 = vld [vmem:[%s1716_s1 + $0xb0] sm:$0xff]  ;;  %v198_v22 = vld [vmem:[%s1716_s1 + $0xb8] sm:$0xff]  ;;  %v199_v23 = vld [vmem:[%s1716_s1 + $0xc0] sm:$0xff] }
  0xe5   :  { %v200_v24 = vld [vmem:[%s1716_s1 + $0xc8] sm:$0xff] }
  0xe8   :  { %137 = vadd.xlane.f32.xlu1 %v136_v25  ;;  %131 = vadd.xlane.f32.xlu0 %v130_v26  ;;  %v201_v25 = vld [vmem:[%s1716_s1 + $0xd0] sm:$0xff]  ;;  %v202_v26 = vld [vmem:[%s1716_s1 + $0xd8] sm:$0xff] }
 0x171   :  { %v129_v29 = vpop.xlane.xlu0 %128  ;;  %v135_v32 = vpop.xlane.xlu1 %134 }
 0x172   :  { %v143_v30 = vadd.f32 %v139_v28, %v129_v29  ;;  %v145_v36 = vadd.f32 %v141_v35, %v135_v32  ;;  %v204_v28 = vld [vmem:[%s1716_s1 + $0xe8] sm:$0xff]  ;;  %v205_v29 = vld [vmem:[%s1716_s1 + $0xf0] sm:$0xff]  ;;  %v574_v32 = vld [vmem:[%s1717_s8 + $0x38] sm:$0xff] }
 0x174   :  { %153 = vperm.xlu0 %1244, %v143_v30   ;;  %v206_v30 = vld [vmem:[%s1716_s1 + $0xf8] sm:$0xff] }
 0x175   :  { %v132_v33 = vpop.xlane.xlu0 %131  ;;  %v138_v38 = vpop.xlane.xlu1 %137 }
 0x176   :  { %v144_v34 = vadd.f32 %v140_v31, %v132_v33  ;;  %v146_v39 = vadd.f32 %v142_v37, %v138_v38  ;;  %v573_v31 = vld [vmem:[%s1717_s8 + $0x30] sm:$0xff] }
 0x177   :  { %v1236_v33 = vpack.c.bf16 %v574_v32, %v573_v31 }
 0x178   :  { %158 = vperm.xlu1 %1245, %v144_v34   ;;  %v1512_v34 = vld [vmem:[%s1719_s7] ss:$0 sm:$0xff] }
 0x179   :  { %1237 = vmatprep.subr.bf16.mxu0 %v1236_v33 }
 0x17a   :  { %1239 = vmatpush3.bf16.msra.mxu0 %v1236_v33 }
 0x17c   :  { %163 = vperm.xlu1 %1245, %v145_v36  }
 0x180   :  { %168 = vperm.xlu1 %1245, %v146_v39  }
 0x1f3   :  { %v154_v51 = vpop.permute.xlu0 %153 }
 0x1f4   :  { %v171_v54 = vmul.f32 %v154_v51, %v147_v50 }
 0x1f7   :  { %v159_v53 = vpop.permute.xlu1 %158 }
 0x1f8   :  { %v172_v55 = vmul.f32 %v159_v53, %v148_v52 }
 0x1fa   :  { %v1216_v56 = vpack.c.bf16 %v172_v55, %v171_v54 }
 0x1fb   :  { %v164_v57 = vpop.permute.xlu1 %163 }
 0x1fc   :  { %1217 = vmatprep.subr.bf16.mxu1 %v1216_v56  ;;  %v173_v61 = vmul.f32 %v164_v57, %v149_v58 }
 0x1fd   :  { %1219 = vmatpush3.bf16.msra.mxu1 %v1216_v56 }
 0x1ff   :  { %v169_v60 = vpop.permute.xlu1 %168 }
 0x200   :  { %v174_v62 = vmul.f32 %v169_v60, %v150_v59 }
 0x202   :  { %v1220_v63 = vpack.c.bf16 %v174_v62, %v173_v61 }
 0x204   :  { %1221 = vmatprep.subr.bf16.mxu1 %v1220_v63 }
 0x205   :  { %1223 = vmatpush3.bf16.msra.mxu1 %v1220_v63 }
 0x208   :  { %1102 = vmatmul.mubr.msk.f32.vlgmr.msra.gmra.mrb[2].mxu1 %vm126_vm2, %v176_v0 }
 0x209   :  { %1104 = vmatprep.mubr.msk.f32.mxu1 %vm126_vm2, %v177_v1 }
 0x20c   :  { %1105 = vmatmul.mubr.msk.f32.gmra.mrb[4].mxu1 %vm126_vm2, %v178_v2 }
 0x20d   :  { %1107 = vmatprep.mubr.msk.f32.mxu1 %vm126_vm2, %v179_v3 }
 0x210   :  { %1108 = vmatmul.mubr.msk.f32.gmra.mrb[6].mxu1 %vm126_vm2, %v180_v4 }
 0x211   :  { %1110 = vmatprep.mubr.msk.f32.mxu1 %vm126_vm2, %v181_v5 }
 0x214   :  { %1111 = vmatmul.mubr.msk.f32.gmra.mrb[8].mxu1 %vm126_vm2, %v182_v6 }
 0x215   :  { %1113 = vmatprep.mubr.msk.f32.mxu1 %vm126_vm2, %v183_v7 }
 0x218   :  { %1114 = vmatmul.mubr.msk.f32.gmra.mrb[10].mxu1 %vm126_vm2, %v184_v8 }
 0x219   :  { %1116 = vmatprep.mubr.msk.f32.mxu1 %vm126_vm2, %v185_v9 }
 0x21c   :  { %1117 = vmatmul.mubr.msk.f32.gmra.mrb[12].mxu1 %vm126_vm2, %v186_v10 }
 0x21d   :  { %1119 = vmatprep.mubr.msk.f32.mxu1 %vm126_vm2, %v187_v11 }
 0x220   :  { %1120 = vmatmul.mubr.msk.f32.gmra.mrb[14].mxu1 %vm126_vm2, %v188_v12 }
 0x221   :  { %1122 = vmatprep.mubr.msk.f32.mxu1 %vm126_vm2, %v189_v13 }
 0x224   :  { %1123 = vmatmul.mubr.msk.f32.gmra.mrb[16].mxu1 %vm126_vm2, %v190_v14 }
 0x225   :  { %1125 = vmatprep.mubr.msk.f32.mxu1 %vm126_vm2, %v191_v15 }
 0x228   :  { %1126 = vmatmul.mubr.msk.f32.gmra.mrb[18].mxu1 %vm126_vm2, %v192_v16 }
 0x229   :  { %1128 = vmatprep.mubr.msk.f32.mxu1 %vm126_vm2, %v193_v17 }
 0x22c   :  { %1129 = vmatmul.mubr.msk.f32.gmra.mrb[20].mxu1 %vm126_vm2, %v194_v18 }
 0x22d   :  { %1131 = vmatprep.mubr.msk.f32.mxu1 %vm126_vm2, %v195_v19 }
 0x230   :  { %1132 = vmatmul.mubr.msk.f32.gmra.mrb[22].mxu1 %vm126_vm2, %v196_v20 }
 0x231   :  { %1134 = vmatprep.mubr.msk.f32.mxu1 %vm126_vm2, %v197_v21 }
 0x234   :  { %1135 = vmatmul.mubr.msk.f32.gmra.mrb[24].mxu1 %vm126_vm2, %v198_v22 }
 0x235   :  { %1137 = vmatprep.mubr.msk.f32.mxu1 %vm126_vm2, %v199_v23 }
 0x238   :  { %1138 = vmatmul.mubr.msk.f32.gmra.mrb[26].mxu1 %vm126_vm2, %v200_v24 }
 0x239   :  { %1140 = vmatprep.mubr.msk.f32.mxu1 %vm126_vm2, %v201_v25 }
 0x23c   :  { %1141 = vmatmul.mubr.msk.f32.gmra.mrb[28].mxu1 %vm126_vm2, %v202_v26 }
 0x23d   :  { %1143 = vmatprep.mubr.msk.f32.mxu1 %vm126_vm2, %v203_v27 }
 0x240   :  { %1144 = vmatmul.mubr.msk.f32.gmra.mrb[30].mxu1 %vm126_vm2, %v204_v28 }
 0x241   :  { %1146 = vmatprep.mubr.msk.f32.mxu1 %vm126_vm2, %v205_v29 }
 0x244   :  { %1147 = vmatmul.mubr.msk.f32.gmra.mrb[32].mxu1 %vm126_vm2, %v206_v30 }
 0x2db   :  { %v1103_v35 = vpop.f32.mrb[2].mxu1 }
 0x2dc   :  { %v382_v36 = vadd.f32 %v1103_v35, %v1512_v34  ;;  %v376_v37 = vpop.f32.mrb[3].mxu1 }
 0x2dd   :  { %v377_v38 = vadd.f32 %v1512_v34, %v376_v37 }
 0x2de   :  { %v536_v41 = vmax.f32 %v382_v36, 0.0 }
 0x2df   :  { %v535_v39 = vmax.f32 %v377_v38, 0.0  ;;  %v1106_v40 = vpop.f32.mrb[4].mxu1 }
 0x2e0   :  { %v392_v42 = vadd.f32 %v1106_v40, %v1512_v34  ;;  %v386_v43 = vpop.f32.mrb[5].mxu1 }
 0x2e1   :  { %v387_v44 = vadd.f32 %v1512_v34, %v386_v43  ;;  %1165 = vmatprep.mubr.msk.f32.mxu0 %vm582_vm3, %v535_v39 }
 0x2e2   :  { %1166 = vmatmul.mubr.msk.f32.vlgmr.msra.gmra.mrb[0].mxu0 %vm582_vm3, %v536_v41  ;;  %v538_v47 = vmax.f32 %v392_v42, 0.0 }
 0x2e3   :  { %v537_v45 = vmax.f32 %v387_v44, 0.0  ;;  %v1109_v46 = vpop.f32.mrb[6].mxu1 }
 0x2e4   :  { %v402_v48 = vadd.f32 %v1109_v46, %v1512_v34  ;;  %v396_v49 = vpop.f32.mrb[7].mxu1 }
 0x2e5   :  { %v397_v50 = vadd.f32 %v1512_v34, %v396_v49  ;;  %1168 = vmatprep.mubr.msk.f32.mxu0 %vm582_vm3, %v537_v45 }
 0x2e6   :  { %1169 = vmatmul.mubr.msk.f32.gmra.mrb[2].mxu0 %vm582_vm3, %v538_v47  ;;  %v540_v53 = vmax.f32 %v402_v48, 0.0 }
 0x2e7   :  { %v539_v51 = vmax.f32 %v397_v50, 0.0  ;;  %v1112_v52 = vpop.f32.mrb[8].mxu1 }
 0x2e8   :  { %v412_v54 = vadd.f32 %v1112_v52, %v1512_v34  ;;  %v406_v55 = vpop.f32.mrb[9].mxu1 }
 0x2e9   :  { %v407_v56 = vadd.f32 %v1512_v34, %v406_v55  ;;  %1171 = vmatprep.mubr.msk.f32.mxu0 %vm582_vm3, %v539_v51 }
 0x2ea   :  { %1172 = vmatmul.mubr.msk.f32.gmra.mrb[4].mxu0 %vm582_vm3, %v540_v53  ;;  %v542_v59 = vmax.f32 %v412_v54, 0.0 }
 0x2eb   :  { %v541_v57 = vmax.f32 %v407_v56, 0.0  ;;  %v1115_v58 = vpop.f32.mrb[10].mxu1 }
 0x2ec   :  { %v422_v60 = vadd.f32 %v1115_v58, %v1512_v34  ;;  %v416_v61 = vpop.f32.mrb[11].mxu1 }
 0x2ed   :  { %v417_v62 = vadd.f32 %v1512_v34, %v416_v61  ;;  %1174 = vmatprep.mubr.msk.f32.mxu0 %vm582_vm3, %v541_v57 }
 0x2ee   :  { %1175 = vmatmul.mubr.msk.f32.gmra.mrb[6].mxu0 %vm582_vm3, %v542_v59  ;;  %v544_v1 = vmax.f32 %v422_v60, 0.0 }
 0x2ef   :  { %v543_v63 = vmax.f32 %v417_v62, 0.0  ;;  %v1118_v0 = vpop.f32.mrb[12].mxu1 }
 0x2f0   :  { %v432_v2 = vadd.f32 %v1118_v0, %v1512_v34  ;;  %v426_v3 = vpop.f32.mrb[13].mxu1 }
 0x2f1   :  { %v427_v4 = vadd.f32 %v1512_v34, %v426_v3  ;;  %1177 = vmatprep.mubr.msk.f32.mxu0 %vm582_vm3, %v543_v63 }
 0x2f2   :  { %1178 = vmatmul.mubr.msk.f32.gmra.mrb[8].mxu0 %vm582_vm3, %v544_v1  ;;  %v546_v7 = vmax.f32 %v432_v2, 0.0 }
 0x2f3   :  { %v545_v5 = vmax.f32 %v427_v4, 0.0  ;;  %v1121_v6 = vpop.f32.mrb[14].mxu1  ;;  %v1581_v4 = vld [vmem:[%s1720_s9] ss:$0 sm:$0xff] }
 0x2f4   :  { %v442_v8 = vadd.f32 %v1121_v6, %v1512_v34  ;;  %v436_v9 = vpop.f32.mrb[15].mxu1 }
 0x2f5   :  { %v437_v10 = vadd.f32 %v1512_v34, %v436_v9  ;;  %1180 = vmatprep.mubr.msk.f32.mxu0 %vm582_vm3, %v545_v5 }
 0x2f6   :  { %1181 = vmatmul.mubr.msk.f32.gmra.mrb[10].mxu0 %vm582_vm3, %v546_v7  ;;  %v548_v13 = vmax.f32 %v442_v8, 0.0 }
 0x2f7   :  { %v547_v11 = vmax.f32 %v437_v10, 0.0  ;;  %v1124_v12 = vpop.f32.mrb[16].mxu1 }
 0x2f8   :  { %v452_v14 = vadd.f32 %v1124_v12, %v1512_v34  ;;  %v446_v15 = vpop.f32.mrb[17].mxu1 }
 0x2f9   :  { %v447_v16 = vadd.f32 %v1512_v34, %v446_v15  ;;  %1183 = vmatprep.mubr.msk.f32.mxu0 %vm582_vm3, %v547_v11 }
 0x2fa   :  { %1184 = vmatmul.mubr.msk.f32.gmra.mrb[12].mxu0 %vm582_vm3, %v548_v13  ;;  %v550_v19 = vmax.f32 %v452_v14, 0.0 }
 0x2fb   :  { %v549_v17 = vmax.f32 %v447_v16, 0.0  ;;  %v1127_v18 = vpop.f32.mrb[18].mxu1 }
 0x2fc   :  { %v462_v20 = vadd.f32 %v1127_v18, %v1512_v34  ;;  %v456_v21 = vpop.f32.mrb[19].mxu1 }
 0x2fd   :  { %v457_v22 = vadd.f32 %v1512_v34, %v456_v21  ;;  %1186 = vmatprep.mubr.msk.f32.mxu0 %vm582_vm3, %v549_v17 }
 0x2fe   :  { %1187 = vmatmul.mubr.msk.f32.gmra.mrb[14].mxu0 %vm582_vm3, %v550_v19  ;;  %v552_v25 = vmax.f32 %v462_v20, 0.0 }
 0x2ff   :  { %v551_v23 = vmax.f32 %v457_v22, 0.0  ;;  %v1130_v24 = vpop.f32.mrb[20].mxu1 }
 0x300   :  { %v472_v26 = vadd.f32 %v1130_v24, %v1512_v34  ;;  %v466_v27 = vpop.f32.mrb[21].mxu1 }
 0x301   :  { %v467_v28 = vadd.f32 %v1512_v34, %v466_v27  ;;  %1189 = vmatprep.mubr.msk.f32.mxu0 %vm582_vm3, %v551_v23 }
 0x302   :  { %1190 = vmatmul.mubr.msk.f32.gmra.mrb[16].mxu0 %vm582_vm3, %v552_v25  ;;  %v554_v31 = vmax.f32 %v472_v26, 0.0 }
 0x303   :  { %v553_v29 = vmax.f32 %v467_v28, 0.0  ;;  %v1133_v30 = vpop.f32.mrb[22].mxu1 }
 0x304   :  { %v482_v32 = vadd.f32 %v1133_v30, %v1512_v34  ;;  %v476_v33 = vpop.f32.mrb[23].mxu1 }
 0x305   :  { %v477_v35 = vadd.f32 %v1512_v34, %v476_v33  ;;  %1192 = vmatprep.mubr.msk.f32.mxu0 %vm582_vm3, %v553_v29 }
 0x306   :  { %1193 = vmatmul.mubr.msk.f32.gmra.mrb[18].mxu0 %vm582_vm3, %v554_v31  ;;  %v556_v38 = vmax.f32 %v482_v32, 0.0 }
 0x307   :  { %v555_v36 = vmax.f32 %v477_v35, 0.0  ;;  %v1136_v37 = vpop.f32.mrb[24].mxu1 }
 0x308   :  { %v492_v39 = vadd.f32 %v1136_v37, %v1512_v34  ;;  %v486_v40 = vpop.f32.mrb[25].mxu1 }
 0x309   :  { %v487_v41 = vadd.f32 %v1512_v34, %v486_v40  ;;  %1195 = vmatprep.mubr.msk.f32.mxu0 %vm582_vm3, %v555_v36 }
 0x30a   :  { %1196 = vmatmul.mubr.msk.f32.gmra.mrb[20].mxu0 %vm582_vm3, %v556_v38  ;;  %v558_v44 = vmax.f32 %v492_v39, 0.0 }
 0x30b   :  { %v557_v42 = vmax.f32 %v487_v41, 0.0  ;;  %v1139_v43 = vpop.f32.mrb[26].mxu1 }
 0x30c   :  { %v502_v45 = vadd.f32 %v1139_v43, %v1512_v34  ;;  %v496_v46 = vpop.f32.mrb[27].mxu1 }
 0x30d   :  { %v497_v47 = vadd.f32 %v1512_v34, %v496_v46  ;;  %1198 = vmatprep.mubr.msk.f32.mxu0 %vm582_vm3, %v557_v42 }
 0x30e   :  { %1199 = vmatmul.mubr.msk.f32.gmra.mrb[22].mxu0 %vm582_vm3, %v558_v44  ;;  %v560_v50 = vmax.f32 %v502_v45, 0.0 }
 0x30f   :  { %v559_v48 = vmax.f32 %v497_v47, 0.0  ;;  %v1142_v49 = vpop.f32.mrb[28].mxu1 }
 0x310   :  { %v512_v51 = vadd.f32 %v1142_v49, %v1512_v34  ;;  %v506_v52 = vpop.f32.mrb[29].mxu1 }
 0x311   :  { %v507_v53 = vadd.f32 %v1512_v34, %v506_v52  ;;  %1201 = vmatprep.mubr.msk.f32.mxu0 %vm582_vm3, %v559_v48 }
 0x312   :  { %1202 = vmatmul.mubr.msk.f32.gmra.mrb[24].mxu0 %vm582_vm3, %v560_v50  ;;  %v562_v56 = vmax.f32 %v512_v51, 0.0 }
 0x313   :  { %v561_v54 = vmax.f32 %v507_v53, 0.0  ;;  %v1145_v55 = vpop.f32.mrb[30].mxu1 }
 0x314   :  { %v522_v57 = vadd.f32 %v1145_v55, %v1512_v34  ;;  %v516_v58 = vpop.f32.mrb[31].mxu1 }
 0x315   :  { %v517_v59 = vadd.f32 %v1512_v34, %v516_v58  ;;  %1204 = vmatprep.mubr.msk.f32.mxu0 %vm582_vm3, %v561_v54 }
 0x316   :  { %1205 = vmatmul.mubr.msk.f32.gmra.mrb[26].mxu0 %vm582_vm3, %v562_v56  ;;  %v564_v62 = vmax.f32 %v522_v57, 0.0 }
 0x317   :  { %v563_v60 = vmax.f32 %v517_v59, 0.0  ;;  %v1148_v61 = vpop.f32.mrb[32].mxu1 }
 0x318   :  { %v532_v63 = vadd.f32 %v1148_v61, %v1512_v34  ;;  %v526_v0 = vpop.f32.mrb[33].mxu1 }
 0x319   :  { %v527_v1 = vadd.f32 %v1512_v34, %v526_v0  ;;  %1207 = vmatprep.mubr.msk.f32.mxu0 %vm582_vm3, %v563_v60 }
 0x31a   :  { %1208 = vmatmul.mubr.msk.f32.gmra.mrb[28].mxu0 %vm582_vm3, %v564_v62  ;;  %v566_v3 = vmax.f32 %v532_v63, 0.0 }
 0x31b   :  { %v565_v2 = vmax.f32 %v527_v1, 0.0 }
 0x31d   :  { %1210 = vmatprep.mubr.msk.f32.mxu0 %vm582_vm3, %v565_v2 }
 0x31e   :  { %1211 = vmatmul.mubr.msk.f32.gmra.mrb[30].mxu0 %vm582_vm3, %v566_v3 }
 0x3b5   :  { %v1167_v5 = vpop.f32.mrb[0].mxu0 }
 0x3b6   :  { %v751_v6 = vadd.f32 %v1167_v5, %v1581_v4  ;;  %v745_v7 = vpop.f32.mrb[1].mxu0 }
 0x3b7   :  { %v746_v34 = vadd.f32 %v1581_v4, %v745_v7 }
 0x3b8   :  { %905 = vst [vmem:[%s1721_s10 + $0x8] sm:$0xff] %v751_v6 }
 0x3b9   :  { %904 = vst [vmem:[%s1721_s10] sm:$0xff] %v746_v34  ;;  %v1170_v8 = vpop.f32.mrb[2].mxu0 }
 0x3ba   :  { %v761_v9 = vadd.f32 %v1170_v8, %v1581_v4  ;;  %v755_v10 = vpop.f32.mrb[3].mxu0 }
 0x3bb   :  { %v756_v11 = vadd.f32 %v1581_v4, %v755_v10 }
 0x3bc   :  { %907 = vst [vmem:[%s1721_s10 + $0x18] sm:$0xff] %v761_v9 }
 0x3bd   :  { %906 = vst [vmem:[%s1721_s10 + $0x10] sm:$0xff] %v756_v11  ;;  %v1173_v12 = vpop.f32.mrb[4].mxu0 }
 0x3be   :  { %v771_v13 = vadd.f32 %v1173_v12, %v1581_v4  ;;  %v765_v14 = vpop.f32.mrb[5].mxu0 }
 0x3bf   :  { %v766_v15 = vadd.f32 %v1581_v4, %v765_v14 }
 0x3c0   :  { %909 = vst [vmem:[%s1721_s10 + $0x28] sm:$0xff] %v771_v13 }
 0x3c1   :  { %908 = vst [vmem:[%s1721_s10 + $0x20] sm:$0xff] %v766_v15  ;;  %v1176_v16 = vpop.f32.mrb[6].mxu0 }
 0x3c2   :  { %v781_v17 = vadd.f32 %v1176_v16, %v1581_v4  ;;  %v775_v18 = vpop.f32.mrb[7].mxu0 }
 0x3c3   :  { %v776_v19 = vadd.f32 %v1581_v4, %v775_v18 }
 0x3c4   :  { %911 = vst [vmem:[%s1721_s10 + $0x38] sm:$0xff] %v781_v17 }
 0x3c5   :  { %910 = vst [vmem:[%s1721_s10 + $0x30] sm:$0xff] %v776_v19  ;;  %v1179_v20 = vpop.f32.mrb[8].mxu0 }
 0x3c6   :  { %v791_v21 = vadd.f32 %v1179_v20, %v1581_v4  ;;  %v785_v22 = vpop.f32.mrb[9].mxu0 }
 0x3c7   :  { %v786_v23 = vadd.f32 %v1581_v4, %v785_v22 }
 0x3c8   :  { %913 = vst [vmem:[%s1721_s10 + $0x48] sm:$0xff] %v791_v21 }
 0x3c9   :  { %912 = vst [vmem:[%s1721_s10 + $0x40] sm:$0xff] %v786_v23  ;;  %v1182_v24 = vpop.f32.mrb[10].mxu0 }
 0x3ca   :  { %v801_v25 = vadd.f32 %v1182_v24, %v1581_v4  ;;  %v795_v26 = vpop.f32.mrb[11].mxu0 }
 0x3cb   :  { %v796_v27 = vadd.f32 %v1581_v4, %v795_v26 }
 0x3cc   :  { %915 = vst [vmem:[%s1721_s10 + $0x58] sm:$0xff] %v801_v25 }
 0x3cd   :  { %914 = vst [vmem:[%s1721_s10 + $0x50] sm:$0xff] %v796_v27  ;;  %v1185_v28 = vpop.f32.mrb[12].mxu0 }
 0x3ce   :  { %v811_v29 = vadd.f32 %v1185_v28, %v1581_v4  ;;  %v805_v30 = vpop.f32.mrb[13].mxu0 }
 0x3cf   :  { %v806_v31 = vadd.f32 %v1581_v4, %v805_v30 }
 0x3d0   :  { %917 = vst [vmem:[%s1721_s10 + $0x68] sm:$0xff] %v811_v29 }
 0x3d1   :  { %916 = vst [vmem:[%s1721_s10 + $0x60] sm:$0xff] %v806_v31  ;;  %v1188_v32 = vpop.f32.mrb[14].mxu0 }
 0x3d2   :  { %v821_v33 = vadd.f32 %v1188_v32, %v1581_v4  ;;  %v815_v35 = vpop.f32.mrb[15].mxu0 }
 0x3d3   :  { %v816_v36 = vadd.f32 %v1581_v4, %v815_v35 }
 0x3d4   :  { %919 = vst [vmem:[%s1721_s10 + $0x78] sm:$0xff] %v821_v33 }
 0x3d5   :  { %918 = vst [vmem:[%s1721_s10 + $0x70] sm:$0xff] %v816_v36  ;;  %v1191_v37 = vpop.f32.mrb[16].mxu0 }
 0x3d6   :  { %v831_v38 = vadd.f32 %v1191_v37, %v1581_v4  ;;  %v825_v39 = vpop.f32.mrb[17].mxu0 }
 0x3d7   :  { %v826_v40 = vadd.f32 %v1581_v4, %v825_v39 }
 0x3d8   :  { %921 = vst [vmem:[%s1721_s10 + $0x88] sm:$0xff] %v831_v38 }
 0x3d9   :  { %920 = vst [vmem:[%s1721_s10 + $0x80] sm:$0xff] %v826_v40  ;;  %v1194_v41 = vpop.f32.mrb[18].mxu0 }
 0x3da   :  { %v841_v42 = vadd.f32 %v1194_v41, %v1581_v4  ;;  %v835_v43 = vpop.f32.mrb[19].mxu0 }
 0x3db   :  { %v836_v44 = vadd.f32 %v1581_v4, %v835_v43 }
 0x3dc   :  { %923 = vst [vmem:[%s1721_s10 + $0x98] sm:$0xff] %v841_v42 }
 0x3dd   :  { %922 = vst [vmem:[%s1721_s10 + $0x90] sm:$0xff] %v836_v44  ;;  %v1197_v45 = vpop.f32.mrb[20].mxu0 }
 0x3de   :  { %v851_v46 = vadd.f32 %v1197_v45, %v1581_v4  ;;  %v845_v47 = vpop.f32.mrb[21].mxu0 }
 0x3df   :  { %v846_v48 = vadd.f32 %v1581_v4, %v845_v47 }
 0x3e0   :  { %925 = vst [vmem:[%s1721_s10 + $0xa8] sm:$0xff] %v851_v46 }
 0x3e1   :  { %924 = vst [vmem:[%s1721_s10 + $0xa0] sm:$0xff] %v846_v48  ;;  %v1200_v49 = vpop.f32.mrb[22].mxu0 }
 0x3e2   :  { %v861_v50 = vadd.f32 %v1200_v49, %v1581_v4  ;;  %v855_v51 = vpop.f32.mrb[23].mxu0 }
 0x3e3   :  { %v856_v52 = vadd.f32 %v1581_v4, %v855_v51 }
 0x3e4   :  { %927 = vst [vmem:[%s1721_s10 + $0xb8] sm:$0xff] %v861_v50 }
 0x3e5   :  { %926 = vst [vmem:[%s1721_s10 + $0xb0] sm:$0xff] %v856_v52  ;;  %v1203_v53 = vpop.f32.mrb[24].mxu0 }
 0x3e6   :  { %v871_v54 = vadd.f32 %v1203_v53, %v1581_v4  ;;  %v865_v55 = vpop.f32.mrb[25].mxu0 }
 0x3e7   :  { %v866_v56 = vadd.f32 %v1581_v4, %v865_v55 }
 0x3e8   :  { %929 = vst [vmem:[%s1721_s10 + $0xc8] sm:$0xff] %v871_v54 }
 0x3e9   :  { %928 = vst [vmem:[%s1721_s10 + $0xc0] sm:$0xff] %v866_v56  ;;  %v1206_v57 = vpop.f32.mrb[26].mxu0 }
 0x3ea   :  { %v881_v58 = vadd.f32 %v1206_v57, %v1581_v4  ;;  %v875_v59 = vpop.f32.mrb[27].mxu0 }
 0x3eb   :  { %v876_v60 = vadd.f32 %v1581_v4, %v875_v59 }
 0x3ec   :  { %931 = vst [vmem:[%s1721_s10 + $0xd8] sm:$0xff] %v881_v58 }
 0x3ed   :  { %930 = vst [vmem:[%s1721_s10 + $0xd0] sm:$0xff] %v876_v60  ;;  %v1209_v61 = vpop.f32.mrb[28].mxu0 }
 0x3ee   :  { %v891_v62 = vadd.f32 %v1209_v61, %v1581_v4  ;;  %v885_v63 = vpop.f32.mrb[29].mxu0 }
 0x3ef   :  { %v886_v0 = vadd.f32 %v1581_v4, %v885_v63 }
 0x3f0   :  { %933 = vst [vmem:[%s1721_s10 + $0xe8] sm:$0xff] %v891_v62 }
 0x3f1   :  { %932 = vst [vmem:[%s1721_s10 + $0xe0] sm:$0xff] %v886_v0  ;;  %v1212_v1 = vpop.f32.mrb[30].mxu0 }
 0x3f2   :  { %v901_v2 = vadd.f32 %v1212_v1, %v1581_v4  ;;  %v895_v3 = vpop.f32.mrb[31].mxu0 }
 0x3f3   :  { %v896_v5 = vadd.f32 %v1581_v4, %v895_v3 }
 0x3f4   :  { %935 = vst [vmem:[%s1721_s10 + $0xf8] sm:$0xff] %v901_v2 }
 0x3f5   :  { %934 = vst [vmem:[%s1721_s10 + $0xf0] sm:$0xff] %v896_v5 }

</bundles_post_ra>
